<compile_context>
chip_gen: v6e
topology: v6e:2x2x1
jax: 0.10.0
libtpu: 0.0.40
codegen_flags: <defaults>
</compile_context>

<pallas_src>
import jax
import jax.numpy as jnp
from jax.experimental import pallas as pl
from jax.experimental.pallas import tpu as pltpu


# ----------------------------------------------------------------------------
# Kernel 1: fused dropout + feature matmul    H = dropout(X) @ W   (bf16 out)
# ----------------------------------------------------------------------------
def _dropout_mm_kernel(x_ref, m_ref, w_ref, h_ref):
    # Apply the pre-drawn keep/scale mask (0 or 1/keep_prob) in f32, then feed
    # the MXU native bf16 operands with an f32 accumulate.
    xd = (x_ref[...].astype(jnp.float32) * m_ref[...]).astype(jnp.bfloat16)
    h = jnp.dot(xd, w_ref[...], preferred_element_type=jnp.float32)
    h_ref[...] = h.astype(h_ref.dtype)


# ----------------------------------------------------------------------------
# Kernel 2: K-tiled adjacency matmul + ReLU   Y = relu(A @ H)
# ----------------------------------------------------------------------------
def _adj_mm_relu_kernel(a_ref, h_ref, o_ref, acc_ref):
    @pl.when(pl.program_id(1) == 0)
    def _():
        acc_ref[...] = jnp.zeros_like(acc_ref)

    acc_ref[...] += jnp.dot(a_ref[...], h_ref[...],
                            preferred_element_type=jnp.float32)

    @pl.when(pl.program_id(1) == pl.num_programs(1) - 1)
    def _():
        o_ref[...] = jnp.maximum(acc_ref[...], 0.0).astype(o_ref.dtype)


# ----------------------------------------------------------------------------
# Wrapper
# ----------------------------------------------------------------------------
def dense_dropout_graph_conv_activation(x, weight, adjacency, *,
                                        keep_prob: float = 1.0,
                                        rng_key=None,
                                        tm: int = 128,
                                        tk: int = 256):
    """relu(A @ (dropout(x) @ W)) with both matmuls on the MXU via Pallas."""
    n, d_in = x.shape
    d_out = weight.shape[1]
    assert adjacency.shape == (n, n)

    tm = min(tm, n)
    tk = min(tk, n)
    assert n % tm == 0 and n % tk == 0, "num_nodes must tile evenly"

    # Dropout keep/scale mask: 1/keep_prob where kept, 0 where dropped.
    if keep_prob < 1.0:
        if rng_key is None:
            rng_key = jax.random.PRNGKey(0)
        keep = jax.random.uniform(rng_key, x.shape) < jnp.float32(keep_prob)
        mask = jnp.where(keep, jnp.float32(1.0 / keep_prob), jnp.float32(0.0))
    else:
        mask = jnp.ones(x.shape, jnp.float32)

    # Pre-cast static operands to bf16 (weight/adjacency are module parameters;
    # this halves their HBM traffic into the kernels and feeds the MXU natively).
    w_bf16 = weight.astype(jnp.bfloat16)
    a_bf16 = adjacency.astype(jnp.bfloat16)

    # --- Stage 1: H = dropout(X) @ W, tiled over node rows, bf16 intermediate -
    h = pl.pallas_call(
        _dropout_mm_kernel,
        out_shape=jax.ShapeDtypeStruct((n, d_out), jnp.bfloat16),
        grid=(n // tm,),
        in_specs=[
            pl.BlockSpec((tm, d_in), lambda i: (i, 0)),
            pl.BlockSpec((tm, d_in), lambda i: (i, 0)),
            pl.BlockSpec((d_in, d_out), lambda i: (0, 0)),
        ],
        out_specs=pl.BlockSpec((tm, d_out), lambda i: (i, 0)),
        compiler_params=pltpu.CompilerParams(
            dimension_semantics=("parallel",)),
    )(x, mask, w_bf16)

    # --- Stage 2: Y = relu(A @ H), 2-D grid (rows, K) with f32 accumulator ----
    y = pl.pallas_call(
        _adj_mm_relu_kernel,
        out_shape=jax.ShapeDtypeStruct((n, d_out), jnp.float32),
        grid=(n // tm, n // tk),
        in_specs=[
            pl.BlockSpec((tm, tk), lambda i, k: (i, k)),
            pl.BlockSpec((tk, d_out), lambda i, k: (k, 0)),
        ],
        out_specs=pl.BlockSpec((tm, d_out), lambda i, k: (i, 0)),
        scratch_shapes=[pltpu.VMEM((tm, d_out), jnp.float32)],
        compiler_params=pltpu.CompilerParams(
            dimension_semantics=("parallel", "arbitrary")),
    )(a_bf16, h)

    return y


# ----------------------------------------------------------------------------
# Deterministic parameter init (Glorot uniform, same as init_glorot in decagon)
# ----------------------------------------------------------------------------
def init_glorot(key, in_channels, out_channels):
    init_range = jnp.sqrt(6.0 / (in_channels + out_channels))
    return jax.random.uniform(key, (in_channels, out_channels),
                              dtype=jnp.float32,
                              minval=-init_range, maxval=init_range)


if __name__ == "__main__":
    num_nodes = 256
    input_dim = 128
    output_dim = 128
    keep_prob = 0.75

    root = jax.random.PRNGKey(0)
    k_x, k_w, k_a, k_drop = jax.random.split(root, 4)

    # node features [num_nodes, input_dim]
    x = jax.random.normal(k_x, (num_nodes, input_dim), dtype=jnp.float32)
    # Glorot weight [input_dim, output_dim]
    weight = init_glorot(k_w, input_dim, output_dim)
    # dense adjacency matrix [num_nodes, num_nodes] (row-normalized random graph)
    adj_raw = (jax.random.uniform(k_a, (num_nodes, num_nodes)) < 0.1).astype(jnp.float32)
    adjacency = adj_raw / jnp.maximum(adj_raw.sum(axis=1, keepdims=True), 1.0)

    out = dense_dropout_graph_conv_activation(
        x, weight, adjacency, keep_prob=keep_prob, rng_key=k_drop)
    out = jax.block_until_ready(out)

    assert out.shape == (num_nodes, output_dim)
    assert out.dtype == jnp.float32
    assert bool(jnp.all(out >= 0.0))          # ReLU applied
    assert bool(jnp.all(jnp.isfinite(out)))

    print("KERNEL_OK")
</pallas_src>

<mosaic_0001>
module attributes {stable_mosaic.version = 11 : i64} {
  func.func @_dropout_mm_kernel(%arg0: i32, %arg1: memref<128x128xf32, #tpu.memory_space<vmem>>, %arg2: memref<128x128xf32, #tpu.memory_space<vmem>>, %arg3: memref<128x128xbf16, #tpu.memory_space<vmem>>, %arg4: memref<128x128xbf16, #tpu.memory_space<vmem>>) attributes {dimension_semantics = [#tpu.dimension_semantics<parallel>], iteration_bounds = array<i64: 2>, scalar_prefetch = 0 : i64, scratch_operands = 0 : i64, tpu.core_type = #tpu.core_type<tc>, window_params = [{transform_indices = @transform_0, window_bounds = array<i64: 128, 128>}, {transform_indices = @transform_1, window_bounds = array<i64: 128, 128>}, {pipeline_mode = #tpu.pipeline_mode<synchronous>, transform_indices = @transform_2, window_bounds = array<i64: 128, 128>}, {transform_indices = @transform_3, window_bounds = array<i64: 128, 128>}]} {
    %c0 = arith.constant 0 : index
    %c0_0 = arith.constant 0 : index
    %0 = vector.load %arg1[%c0, %c0_0] : memref<128x128xf32, #tpu.memory_space<vmem>>, vector<128x128xf32>
    %c0_1 = arith.constant 0 : index
    %c0_2 = arith.constant 0 : index
    %1 = vector.load %arg2[%c0_1, %c0_2] : memref<128x128xf32, #tpu.memory_space<vmem>>, vector<128x128xf32>
    %2 = arith.mulf %0, %1 : vector<128x128xf32>
    %3 = arith.truncf %2 : vector<128x128xf32> to vector<128x128xbf16>
    %c0_3 = arith.constant 0 : index
    %c0_4 = arith.constant 0 : index
    %4 = vector.load %arg3[%c0_3, %c0_4] : memref<128x128xbf16, #tpu.memory_space<vmem>>, vector<128x128xbf16>
    %cst = arith.constant dense<0.000000e+00> : vector<128x128xf32>
    %5 = tpu.matmul %3, %4, %cst {dimension_numbers = #tpu.dot_dimension_numbers<[1], [0], [0], [1], [0, 0, 1, 1], [], []>} : vector<128x128xbf16>, vector<128x128xbf16>, vector<128x128xf32> -> vector<128x128xf32>
    %6 = arith.truncf %5 : vector<128x128xf32> to vector<128x128xbf16>
    %c0_5 = arith.constant 0 : index
    %c0_6 = arith.constant 0 : index
    %7 = vector.load %arg4[%c0_5, %c0_6] : memref<128x128xbf16, #tpu.memory_space<vmem>>, vector<128x128xbf16>
    tpu.vector_store %arg4[%c0_5, %c0_6], %6 {strides = array<i32>} : memref<128x128xbf16, #tpu.memory_space<vmem>>, vector<128x128xbf16>,
    return
  }
  func.func @transform_0(%arg0: i32) -> (i32, i32) {
    %c0_i32 = arith.constant 0 : i32
    %c0_i32_0 = arith.constant 0 : i32
    return %arg0, %c0_i32 : i32, i32
  }
  func.func @transform_1(%arg0: i32) -> (i32, i32) {
    %c0_i32 = arith.constant 0 : i32
    %c0_i32_0 = arith.constant 0 : i32
    return %arg0, %c0_i32 : i32, i32
  }
  func.func @transform_2(%arg0: i32) -> (i32, i32) {
    %c0_i32 = arith.constant 0 : i32
    %c0_i32_0 = arith.constant 0 : i32
    %c0_i32_1 = arith.constant 0 : i32
    return %c0_i32, %c0_i32_0 : i32, i32
  }
  func.func @transform_3(%arg0: i32) -> (i32, i32) {
    %c0_i32 = arith.constant 0 : i32
    %c0_i32_0 = arith.constant 0 : i32
    return %arg0, %c0_i32 : i32, i32
  }
}

</mosaic_0001>

<bundles_post_ra>
// kernel: tpu_custom_call.1
= control target key start
LH: loop header
LB: loop body
LE: loop exit
PB: predicated region body
PF: predicated region fallthrough
CT: control target
= control target key end

     0   :  { %8 = vsyncpa [#allocation3], 0  ;;  %s1368_s0 = inlined_call_operand.hbm [shape: f32[256,128], index: 0, kind: input, shape index: {}]   ;;  %s1369_s1 = inlined_call_operand.hbm [shape: f32[256,128], index: 1, kind: input, shape index: {}]   ;;  %s1370_s2 = inlined_call_operand.hbm [shape: bf16[128,128], index: 2, kind: input, shape index: {}]   ;;  %s1371_s3 = inlined_call_operand.hbm [shape: bf16[256,128], index: 3, kind: output, shape index: {}]  }
   0x1   :  { %10 = vsyncpa [#allocation3 + $0x1], 0 }
   0x2   :  { %11 = vsyncpa [#allocation6], 0 }
   0x3   :  { %13 = vsyncpa [#allocation6 + $0x1], 0 }
   0x4   :  { %14 = vsyncpa [#allocation4], 0 }
   0x5   :  { %16 = vsyncpa [#allocation4 + $0x1], 0  ;;  %s1099_s12 = smov 0   ;;  %s1101_s13 = smov 0  }
   0x6   :  { %s1103_s14 = smov 0   ;;  %s1105_s15 = smov 0  }
   0x7 LB: > { %s1120_s16 = sadd.s32 4294967295, %s1067_s15   ;;  %s663_s17 = sadd.s32 4294967294, %s1067_s15   ;;  %s1067_s15 = sphi %s1105_s15, %s1391_s15   ;;  %s1063_s14 = sphi %s1103_s14, %s1390_s14   ;;  %s1059_s13 = sphi %s1101_s13, %s1389_s13   ;;  %s1055_s12 = sphi %s1099_s12, %s1388_s12  }
   0x8   : > { %p42_p0 = scmp.ne.s32.totalorder %s1059_s13, %s1055_s12  ;;  %p1372_p1 = scmp.eq.s32.totalorder %s1120_s16, 0 }
   0x9   : > { %p119_p3 = scmp.eq.s32.totalorder %s663_s17, 1  ;;  %p664_p5 = scmp.ge.s32.totalorder %s1067_s15, 1 }
   0xa   : > { %p1129_p4 = por %p1372_p1, %p42_p0  ;;  %p126_p7 = scmp.lt.s32.totalorder %s1067_s15, 3 }
   0xb   : > { %p1134_p6 = por %p119_p3, %p42_p0  ;;  %s1069_s21 = smov [#allocation7]  }
   0xc   : > { %s1375_s18 = scalar_select %p1129_p4, 1, 0 }
   0xd   : > { %s1376_s19 = scalar_select %p1134_p6, 1, 0 }
   0xe   : > { %p1139_p8 = pnand %p664_p5, %p126_p7  ;;  %s138_s22 = sshll.u32 %s1069_s21, 4  ;;  %s139_s22 = int_to_ptr.vmem [resolvable:$true] %s138_s22 }
   0xf   : > { %s1153_s24 = sadd.s32 1, %s1067_s15   ;;  %s29_s25 = sadd.s32 1, %s1063_s14 }
  0x10   : > { %p847_p9 = pneg %p1139_p8  ;;  %s26_s26 = ssub.s32 %s1067_s15, %s1153_s24 }
  0x11   : > { %s924_s27 = scalar_lea.vmem %s139_s22, 1024  ;;  %p932_p5 = scmp.lt.s32.totalorder %s139_s22, %s139_s22 }
  0x12   : > { %p1148_p11 = pnand %p847_p9, %p1372_p1  ;;  %p925_p13 = scmp.ne.s32.totalorder %s139_s22, %s924_s27 }
  0x13   : > { %p933_p7 = scmp.lt.s32.totalorder %s924_s27, %s924_s27 }
  0x14   : > { %p915_p12 = pneg %p1148_p11 }
  0x15   : > { %p934_p10 = por %p933_p7, %p932_p5 }
  0x16   : > { %p927_p0 = pnand %p925_p13, %p915_p12 }
  0x18   : > { %p928_p3 = pneg %p927_p0 }
  0x1a   : > { %p935_p2 = pnand %p934_p10, %p928_p3 }
  0x1c   : > { %938 = shalt.err (!%p935_p2)
}
  0x1d   : > { %s1070_s28 = smov 64   ;;  %s1071_s29 = smov 4  }
  0x1e   : > { %850 = dma.hbm_to_vmem [thread:$0]  (!%p1148_p11), %s1370_s2, 1024, %s139_s22, [#allocation6], %s1070_s28, %s1070_s28, %s1071_s29  }
  0x1f   : > { %p27_p9 = scmp.eq.s32.totalorder %s26_s26, 0  ;;  %p36_p10 = scmp.ne.s32.totalorder %s1063_s14, %s1059_s13 }
  0x20   : > { %p37_p2 = scmp.eq.s32.totalorder %s1067_s15, 0  ;;  %p863_p12 = scmp.lt.s32.totalorder %s1067_s15, 2 }
  0x21   : > { %s1170_s5 = scalar_select %p27_p9, %s1063_s14, %s29_s25  }
  0x22   : > { %p38_p13 = por %p37_p2, %p36_p10  ;;  %p1379_p0 = scmp.eq.s32.totalorder %s1120_s16, 1 }
  0x23   : > { %s152_s7 = sand.u32 1, %s1063_s14   ;;  %s707_s8 = sshll.u32 %s1067_s15, 11 }
  0x24   : > { %p1174_p3 = por %p1379_p0, %p36_p10  ;;  %s1180_s9 = sshll.u32 %s152_s7, 7 }
  0x25   : > { %s1187_s17 = scalar_lea.hbm %s1368_s0, %s707_s8  ;;  %s156_s21 = scalar_lea.vmem [#allocation2], %s1180_s9 }
  0x26   : > { %s1380_s6 = scalar_select %p1174_p3, 1, 0 }
  0x27   : > { %s163_s22 = sshll.u32 %s156_s21, 4  ;;  %p1190_p11 = pnand %p863_p12, %p38_p13  ;;  %s1194_s22 = int_to_ptr.vmem [resolvable:$true] %s163_s22 }
  0x28   : > { %s1196_s25 = scalar_lea.sflag [#allocation3], %s152_s7  ;;  %s939_s26 = scalar_lea.hbm %s1187_s17, 2048 }
  0x29   : > { %p940_p5 = scmp.ne.s32.totalorder %s1187_s17, %s939_s26  ;;  %p941_p7 = pneg %p1190_p11 }
  0x2a   : > { %s944_s29 = scalar_lea.hbm %s1368_s0, 4096  ;;  %p945_p2 = scmp.lt.s32.totalorder %s1187_s17, %s1368_s0 }
  0x2b   : > { %p942_p9 = pnand %p941_p7, %p940_p5  ;;  %p946_p12 = scmp.lt.s32.totalorder %s944_s29, %s939_s26 }
  0x2d   : > { %p943_p10 = pneg %p942_p9  ;;  %p947_p13 = por %p946_p12, %p945_p2 }
  0x2f   : > { %p948_p0 = pnand %p947_p13, %p943_p10 }
  0x31   : > { %951 = shalt.err (!%p948_p0)
}
  0x32   : > { %s952_s7 = scalar_lea.vmem %s1194_s22, 2048  ;;  %s1072_s10 = smov [#allocation2]  }
  0x33   : > { %p953_p1 = scmp.ne.s32.totalorder %s1194_s22, %s952_s7  ;;  %s957_s11 = sshll.u32 %s1072_s10, 4  ;;  %s958_s11 = int_to_ptr.vmem [resolvable:$false] %s957_s11 }
  0x34   : > { %s959_s21 = scalar_lea.vmem %s958_s11, 4096  ;;  %p960_p6 = scmp.lt.s32.totalorder %s1194_s22, %s958_s11 }
  0x35   : > { %p955_p5 = pnand %p953_p1, %p941_p7  ;;  %p961_p3 = scmp.lt.s32.totalorder %s959_s21, %s952_s7 }
  0x37   : > { %p956_p9 = pneg %p955_p5  ;;  %p962_p4 = por %p961_p3, %p960_p6 }
  0x39   : > { %p963_p2 = pnand %p962_p4, %p956_p9 }
  0x3b   : > { %966 = shalt.err (!%p963_p2)
}
  0x3c   : > { %s1073_s26 = smov 128   ;;  %s1074_s27 = smov 8  }
  0x3d   : > { %854 = dma.hbm_to_vmem [thread:$0]  (!%p1190_p11), %s1187_s17, 2048, %s1194_s22, %s1196_s25, %s1073_s26, %s1073_s26, %s1074_s27  }
  0x3e   : > { %s1231_s30 = scalar_lea.hbm %s1369_s1, %s707_s8  ;;  %s177_s4 = scalar_lea.vmem [#allocation5], %s1180_s9 }
  0x3f   : > { %s184_s7 = sshll.u32 %s177_s4, 4  ;;  %s173_s10 = sand.u32 1, %s1067_s15   ;;  %s1235_s7 = int_to_ptr.vmem [resolvable:$true] %s184_s7 }
  0x40   : > { %s174_s11 = scalar_lea.sflag [#allocation6], %s173_s10  ;;  %s967_s21 = scalar_lea.hbm %s1231_s30, 2048 }
  0x41   : > { %p968_p1 = scmp.ne.s32.totalorder %s1231_s30, %s967_s21  ;;  %s972_s8 = scalar_lea.hbm %s1369_s1, 4096 }
  0x42   : > { %p973_p3 = scmp.lt.s32.totalorder %s1231_s30, %s1369_s1  ;;  %p974_p10 = scmp.lt.s32.totalorder %s972_s8, %s967_s21 }
  0x43   : > { %p970_p4 = pnand %p968_p1, %p941_p7 }
  0x44   : > { %p975_p12 = por %p974_p10, %p973_p3 }
  0x45   : > { %p971_p6 = pneg %p970_p4 }
  0x47   : > { %p976_p13 = pnand %p975_p12, %p971_p6 }
  0x49   : > { %979 = shalt.err (!%p976_p13)
}
  0x4a   : > { %s980_s9 = scalar_lea.vmem %s1235_s7, 2048  ;;  %s1075_s29 = smov [#allocation5]  }
  0x4b   : > { %p981_p0 = scmp.ne.s32.totalorder %s1235_s7, %s980_s9  ;;  %s985_s4 = sshll.u32 %s1075_s29, 4  ;;  %s986_s4 = int_to_ptr.vmem [resolvable:$false] %s985_s4 }
  0x4c   : > { %s987_s10 = scalar_lea.vmem %s986_s4, 4096  ;;  %p988_p2 = scmp.lt.s32.totalorder %s1235_s7, %s986_s4 }
  0x4d   : > { %p983_p5 = pnand %p981_p0, %p941_p7  ;;  %p989_p1 = scmp.lt.s32.totalorder %s987_s10, %s980_s9 }
  0x4f   : > { %p984_p9 = pneg %p983_p5  ;;  %p990_p4 = por %p989_p1, %p988_p2 }
  0x51   : > { %p991_p3 = pnand %p990_p4, %p984_p9 }
  0x53   : > { %994 = shalt.err (!%p991_p3)
}
  0x54   : > { %857 = dma.hbm_to_vmem [thread:$0]  (!%p1190_p11), %s1231_s30, 2048, %s1235_s7, %s174_s11, %s1073_s26, %s1073_s26, %s1074_s27  }
  0x55   : > { %196 = sbr.rel (%p1139_p8) target bundleno = 353 (0x161), region = 32  ;;  %s1265_s21 = sand.u32 (!%p1139_p8), 1, %s1059_s13  }
  0x56   : > { %s674_s17 = sshll.u32 (!%p1139_p8), %s1265_s21, 7  ;;  %s199_s22 = scalar_lea.sflag (!%p1139_p8), [#allocation3], %s1265_s21 }
  0x57   : > { %s1269_s8 = scalar_lea.vmem (!%p1139_p8), [#allocation2], %s674_s17  ;;  %p1382_p7 = scmp.ne.s32.totalorder (!%p1139_p8), %s1375_s18, 0 }
  0x5a   : > { %1038 = dma.done.wait (%p1382_p7), %s199_s22, 2048  }
  0x5b   : > { %1040 = vsyncadd (%p1382_p7), %s199_s22, 4294965248  ;;  %s207_s23 = sand.u32 1, %s1120_s16   ;;  %s1276_s26 = scalar_lea.vmem [#allocation5], %s674_s17 }
  0x5c   : > { %s208_s20 = scalar_lea.sflag [#allocation6], %s207_s23 }
  0x5d   : > { %1042 = dma.done.wait (%p1382_p7), %s208_s20, 2048  }
  0x5e   : > { %1044 = vsyncadd (%p1382_p7), %s208_s20, 4294965248  ;;  %p1383_p8 = scmp.eq.s32.totalorder %s1120_s16, 0 }
  0x60   : > { %1046 = dma.done.wait (%p1383_p8), [#allocation6], 1024   ;;  %p1384_p11 = pmov %p1383_p8 }
  0x61   : > { %v905_v0 = vld [vmem:[#allocation7 + $0x38] sm:$0xff]   ;;  %v906_v1 = vld [vmem:[#allocation7 + $0x30] sm:$0xff]   ;;  %v907_v2 = vld [vmem:[#allocation7 + $0x28] sm:$0xff]   ;;  %s677_s18 = sshll.u32 %s1265_s21, 6  ;;  %s725_s7 = sshll.u32 %s1120_s16, 10 }
  0x62   : > { %1048 = vsyncadd (%p1384_p11), [#allocation6], 4294966272  ;;  %789 = vmatprep.subr.bf16.mxu0 %v905_v0  ;;  %821 = vmatprep.subr.bf16.mxu1 %v905_v0  ;;  %v908_v3 = vld [vmem:[#allocation7 + $0x20] sm:$0xff]   ;;  %v248_v5 = vld [vmem:[%s1269_s8 + $0x8] sm:$0xff]  ;;  %s242_s27 = scalar_lea.vmem [#allocation8], %s677_s18  ;;  %s1325_s28 = scalar_lea.hbm %s1371_s3, %s725_s7 }
  0x63   : > { %790 = vmatpush3.bf16.msra.mxu0 %v905_v0  ;;  %829 = vmatpush3.bf16.msra.mxu1 %v905_v0  ;;  %v247_v4 = vld [vmem:[%s1269_s8] sm:$0xff]  ;;  %v264_v7 = vld [vmem:[%s1276_s26 + $0x8] sm:$0xff]  ;;  %v909_v16 = vld [vmem:[#allocation7 + $0x18] sm:$0xff]   ;;  %s558_s30 = sshll.u32 %s242_s27, 4  ;;  %s545_s16 = scalar_lea.sflag [#allocation4], %s1265_s21  ;;  %s1320_s30 = int_to_ptr.vmem [resolvable:$true] %s558_s30 }
  0x64   : > { %791 = vmatprep.subr.bf16.mxu0 %v906_v1  ;;  %822 = vmatprep.subr.bf16.mxu1 %v906_v1  ;;  %v263_v6 = vld [vmem:[%s1276_s26] sm:$0xff]  ;;  %v256_v10 = vld [vmem:[%s1269_s8 + $0x48] sm:$0xff]  ;;  %v280_v11 = vmul.f32 %v264_v7, %v248_v5  ;;  %v910_v19 = vld [vmem:[#allocation7 + $0x10] sm:$0xff]   ;;  %s995_s9 = scalar_lea.vmem %s1320_s30, 1024  ;;  %p1385_p10 = scmp.ne.s32.totalorder %s1380_s6, 0 }
  0x65   : > { %v279_v8 = vmul.f32 %v263_v6, %v247_v4  ;;  %v255_v9 = vld [vmem:[%s1269_s8 + $0x40] sm:$0xff]  ;;  %v272_v13 = vld [vmem:[%s1276_s26 + $0x48] sm:$0xff]  ;;  %v249_v21 = vld [vmem:[%s1269_s8 + $0x10] sm:$0xff]  ;;  %p996_p6 = scmp.ne.s32.totalorder %s1320_s30, %s995_s9  ;;  %s1076_s29 = smov [#allocation8]  }
  0x66   : > { %v271_v12 = vld [vmem:[%s1276_s26 + $0x40] sm:$0xff]  ;;  %v288_v15 = vmul.f32 %v272_v13, %v256_v10  ;;  %v911_v20 = vld [vmem:[#allocation7 + $0x8] sm:$0xff]   ;;  %v265_v22 = vld [vmem:[%s1276_s26 + $0x10] sm:$0xff]  ;;  %s999_s4 = sshll.u32 %s1076_s29, 4  ;;  %s1000_s4 = int_to_ptr.vmem [resolvable:$false] %s999_s4 }
  0x67   : > { %792 = vmatpush3.bf16.msra.mxu0 %v906_v1  ;;  %830 = vmatpush3.bf16.msra.mxu1 %v906_v1  ;;  %v287_v14 = vmul.f32 %v271_v12, %v255_v9  ;;  %v295_v17 = vpack.c.bf16 %v280_v11, %v279_v8  ;;  %v250_v23 = vld [vmem:[%s1269_s8 + $0x18] sm:$0xff]  ;;  %v257_v25 = vld [vmem:[%s1269_s8 + $0x50] sm:$0xff]  ;;  %v912_v28 = vld [vmem:[#allocation7] sm:$0xff]   ;;  %v281_v38 = vmul.f32 %v265_v22, %v249_v21  ;;  %p997_p12 = pnand %p996_p6, %p1385_p10  ;;  %s1001_s10 = scalar_lea.vmem %s1000_s4, 2048 }
  0x68   : > { %793 = vmatprep.subr.bf16.mxu0 %v907_v2  ;;  %823 = vmatprep.subr.bf16.mxu1 %v907_v2  ;;  %v266_v24 = vld [vmem:[%s1276_s26 + $0x18] sm:$0xff]  ;;  %v273_v27 = vld [vmem:[%s1276_s26 + $0x50] sm:$0xff]  ;;  %v251_v30 = vld [vmem:[%s1269_s8 + $0x20] sm:$0xff]  ;;  %p1002_p0 = scmp.lt.s32.totalorder %s1320_s30, %s1000_s4  ;;  %p1003_p5 = scmp.lt.s32.totalorder %s1001_s10, %s995_s9 }
  0x69   : > { %v299_v18 = vpack.c.bf16 %v288_v15, %v287_v14  ;;  %805 = vmatprep.mubr.bf16.mxu0 %v295_v17  ;;  %v258_v26 = vld [vmem:[%s1269_s8 + $0x58] sm:$0xff]  ;;  %v252_v31 = vld [vmem:[%s1269_s8 + $0x28] sm:$0xff]  ;;  %v267_v32 = vld [vmem:[%s1276_s26 + $0x20] sm:$0xff]  ;;  %v282_v39 = vmul.f32 %v266_v24, %v250_v23  ;;  %v289_v40 = vmul.f32 %v273_v27, %v257_v25  ;;  %p998_p13 = pneg %p997_p12 }
  0x6a   : > { %v274_v29 = vld [vmem:[%s1276_s26 + $0x58] sm:$0xff]  ;;  %v268_v33 = vld [vmem:[%s1276_s26 + $0x28] sm:$0xff]  ;;  %v259_v34 = vld [vmem:[%s1269_s8 + $0x60] sm:$0xff]  ;;  %v283_v42 = vmul.f32 %v267_v32, %v251_v30  ;;  %p1004_p9 = por %p1003_p5, %p1002_p0 }
  0x6b   : > { %794 = vmatpush3.bf16.msra.mxu0 %v907_v2  ;;  %831 = vmatpush3.bf16.msra.mxu1 %v907_v2  ;;  %v260_v35 = vld [vmem:[%s1269_s8 + $0x68] sm:$0xff]  ;;  %v275_v36 = vld [vmem:[%s1276_s26 + $0x60] sm:$0xff]  ;;  %v290_v41 = vmul.f32 %v274_v29, %v258_v26  ;;  %v284_v43 = vmul.f32 %v268_v33, %v252_v31  ;;  %v253_v46 = vld [vmem:[%s1269_s8 + $0x30] sm:$0xff]  ;;  %v296_v48 = vpack.c.bf16 %v282_v39, %v281_v38 }
  0x6c   : > { %795 = vmatprep.subr.bf16.mxu0 %v908_v3  ;;  %824 = vmatprep.subr.bf16.mxu1 %v908_v3  ;;  %v276_v37 = vld [vmem:[%s1276_s26 + $0x68] sm:$0xff]  ;;  %v291_v44 = vmul.f32 %v275_v36, %v259_v34  ;;  %v254_v47 = vld [vmem:[%s1269_s8 + $0x38] sm:$0xff]  ;;  %v269_v50 = vld [vmem:[%s1276_s26 + $0x30] sm:$0xff]  ;;  %p1005_p2 = pnand %p1004_p9, %p998_p13 }
  0x6d   : > { %813 = vmatprep.mubr.bf16.mxu1 %v299_v18  ;;  %v292_v45 = vmul.f32 %v276_v37, %v260_v35  ;;  %v300_v49 = vpack.c.bf16 %v290_v41, %v289_v40  ;;  %v270_v51 = vld [vmem:[%s1276_s26 + $0x38] sm:$0xff]  ;;  %v261_v52 = vld [vmem:[%s1269_s8 + $0x70] sm:$0xff]  ;;  %v297_v53 = vpack.c.bf16 %v284_v43, %v283_v42  ;;  %v285_v58 = vmul.f32 %v269_v50, %v253_v46 }
  0x6e   : > { %v262_v55 = vld [vmem:[%s1269_s8 + $0x78] sm:$0xff]  ;;  %v277_v56 = vld [vmem:[%s1276_s26 + $0x70] sm:$0xff]  ;;  %v286_v59 = vmul.f32 %v270_v51, %v254_v47 }
  0x6f   : > { %796 = vmatpush3.bf16.msra.mxu0 %v908_v3  ;;  %832 = vmatpush3.bf16.msra.mxu1 %v908_v3  ;;  %v301_v54 = vpack.c.bf16 %v292_v45, %v291_v44  ;;  %v278_v57 = vld [vmem:[%s1276_s26 + $0x78] sm:$0xff]  ;;  %v293_v60 = vmul.f32 %v277_v56, %v261_v52 }
  0x70   : > { %797 = vmatprep.subr.bf16.mxu0 %v909_v16  ;;  %825 = vmatprep.subr.bf16.mxu1 %v909_v16  ;;  %v294_v61 = vmul.f32 %v278_v57, %v262_v55  ;;  %v298_v62 = vpack.c.bf16 %v286_v59, %v285_v58 }
  0x72   : > { %v302_v63 = vpack.c.bf16 %v294_v61, %v293_v60 }
  0x73   : > { %798 = vmatpush3.bf16.msra.mxu0 %v909_v16  ;;  %833 = vmatpush3.bf16.msra.mxu1 %v909_v16 }
  0x74   : > { %799 = vmatprep.subr.bf16.mxu0 %v910_v19  ;;  %826 = vmatprep.subr.bf16.mxu1 %v910_v19 }
  0x77   : > { %800 = vmatpush3.bf16.msra.mxu0 %v910_v19  ;;  %834 = vmatpush3.bf16.msra.mxu1 %v910_v19 }
  0x78   : > { %801 = vmatprep.subr.bf16.mxu0 %v911_v20  ;;  %827 = vmatprep.subr.bf16.mxu1 %v911_v20 }
  0x7b   : > { %802 = vmatpush3.bf16.msra.mxu0 %v911_v20  ;;  %835 = vmatpush3.bf16.msra.mxu1 %v911_v20 }
  0x7c   : > { %803 = vmatprep.subr.bf16.mxu0 %v912_v28  ;;  %828 = vmatprep.subr.bf16.mxu1 %v912_v28 }
  0x7f   : > { %804 = vmatpush3.bf16.msra.mxu0 %v912_v28  ;;  %836 = vmatpush3.bf16.msra.mxu1 %v912_v28 }
  0x82   : > { %806 = vmatmul.mubr.bf16.vlgmr.msra.gmra.mxu0 %v296_v48  ;;  %814 = vmatmul.mubr.bf16.vlgmr.msra.gmra.mxu1 %v300_v49 }
  0x83   : > { %809 = vmatprep.mubr.bf16.mxu0 %v297_v53  ;;  %817 = vmatprep.mubr.bf16.mxu1 %v301_v54 }
  0x8a   : > { %810 = vmatmul.mubr.bf16.gmra.mxu0 %v298_v62  ;;  %818 = vmatmul.mubr.bf16.gmra.mxu1 %v302_v63 }
 0x142   : > { %v807_v0 = vpop.f32.mrf.mxu0  ;;  %v815_v1 = vpop.f32.mrf.mxu1 }
 0x144   : > { %v401_v2 = vpop.f32.mrf.mxu0  ;;  %v433_v3 = vpop.f32.mrf.mxu1 }
 0x146   : > { %v808_v4 = vpop.f32.mrf.mxu0  ;;  %v816_v5 = vpop.f32.mrf.mxu1 }
 0x147   : > { %v734_v6 = vpack.c.bf16 %v808_v4, %v807_v0  ;;  %v754_v7 = vpack.c.bf16 %v816_v5, %v815_v1 }
 0x148   : > { %v404_v8 = vpop.f32.mrf.mxu0  ;;  %v436_v9 = vpop.f32.mrf.mxu1 }
 0x149   : > { %766 = vst [vmem:[%s242_s27 + $0x8] sm:$0xff] %v734_v6   ;;  %770 = vst [vmem:[%s242_s27 + $0x28] sm:$0xff] %v754_v7   ;;  %v729_v10 = vpack.c.bf16 %v404_v8, %v401_v2  ;;  %v749_v11 = vpack.c.bf16 %v436_v9, %v433_v3 }
 0x14a   : > { %v811_v12 = vpop.f32.mrf.mxu0  ;;  %v819_v13 = vpop.f32.mrf.mxu1 }
 0x14b   : > { %730 = vst [vmem:[%s242_s27] sm:$0xff] %v729_v10   ;;  %769 = vst [vmem:[%s242_s27 + $0x20] sm:$0xff] %v749_v11  }
 0x14c   : > { %v417_v14 = vpop.f32.mrf.mxu0  ;;  %v449_v15 = vpop.f32.mrf.mxu1 }
 0x14e   : > { %v812_v16 = vpop.f32.mrf.mxu0  ;;  %v820_v17 = vpop.f32.mrf.mxu1 }
 0x14f   : > { %v744_v18 = vpack.c.bf16 %v812_v16, %v811_v12  ;;  %v764_v19 = vpack.c.bf16 %v820_v17, %v819_v13 }
 0x150   : > { %v420_v20 = vpop.f32.mrf.mxu0  ;;  %v452_v21 = vpop.f32.mrf.mxu1 }
 0x151   : > { %768 = vst [vmem:[%s242_s27 + $0x18] sm:$0xff] %v744_v18   ;;  %772 = vst [vmem:[%s242_s27 + $0x38] sm:$0xff] %v764_v19   ;;  %v739_v22 = vpack.c.bf16 %v420_v20, %v417_v14  ;;  %v759_v23 = vpack.c.bf16 %v452_v21, %v449_v15 }
 0x153   : > { %767 = vst [vmem:[%s242_s27 + $0x10] sm:$0xff] %v739_v22   ;;  %771 = vst [vmem:[%s242_s27 + $0x30] sm:$0xff] %v759_v23  }
 0x154   : > { %1008 = shalt.err (!%p1005_p2)
}
 0x155   : > { %s1009_s17 = scalar_lea.hbm %s1325_s28, 1024  ;;  %s1013_s23 = scalar_lea.hbm %s1371_s3, 2048 }
 0x156   : > { %p1010_p1 = scmp.ne.s32.totalorder %s1325_s28, %s1009_s17  ;;  %p1014_p7 = scmp.lt.s32.totalorder %s1325_s28, %s1371_s3 }
 0x157   : > { %p1015_p8 = scmp.lt.s32.totalorder %s1013_s23, %s1009_s17 }
 0x158   : > { %p1011_p4 = pnand %p1010_p1, %p1385_p10 }
 0x159   : > { %p1016_p11 = por %p1015_p8, %p1014_p7 }
 0x15a   : > { %p1012_p3 = pneg %p1011_p4 }
 0x15c   : > { %p1017_p6 = pnand %p1016_p11, %p1012_p3 }
 0x15e   : > { %1020 = shalt.err (!%p1017_p6)
}
 0x15f   : > { %s1077_s18 = smov 64   ;;  %s1078_s27 = smov 4  }
 0x160   : > { %845 = dma.vmem_to_hbm [thread:$0]  (%p1385_p10), %s1320_s30, 1024, %s1325_s28, %s545_s16, %s1077_s18, %s1077_s18, %s1078_s27  }
 0x161 PF: > { %s573_s7 = sand.u32 1, %s1055_s12   ;;  %p1386_p12 = scmp.ne.s32.totalorder %s1376_s19, 0 }
 0x162   : > { %p1387_p13 = scmp.ge.s32.totalorder %s1067_s15, 2  ;;  %s574_s11 = scalar_lea.sflag [#allocation4], %s573_s7 }
 0x164   : > { %p859_p0 = pnand %p1387_p13, %p1386_p12 }
 0x166   : > { %p860_p5 = pneg %p859_p0 }
 0x168   : > { %1050 = dma.done.wait (%p860_p5), %s574_s11, 1024  }
 0x169   : > { %1052 = vsyncadd (%p860_p5), %s574_s11, 4294966272  ;;  %p19_p9 = scmp.ge.s32.totalorder %s1153_s24, 4   ;;  %s1388_s12 = smov %s1059_s13 }
 0x16a   : > { %s1389_s13 = smov %s1063_s14  ;;  %s1390_s14 = smov %s1170_s5 }
 0x16b   : > { %s1391_s15 = smov %s1153_s24  ;;  %21 = sbr.rel (!%p19_p9) target bundleno = 7 (0x7), region = 94 }
 0x170   :  { %579 = vsyncpa [#allocation3], 1 }
 0x171   :  { %581 = vsyncpa [#allocation3 + $0x1], 1 }
 0x172   :  { %582 = vsyncpa [#allocation6], 1 }
 0x173   :  { %584 = vsyncpa [#allocation6 + $0x1], 1 }
 0x174   :  { %585 = vsyncpa [#allocation4], 1 }
 0x175   :  { %587 = vsyncpa [#allocation4 + $0x1], 1 }

</bundles_post_ra>
